<compile_context>
chip_gen: v6e
topology: v6e:2x2x1
jax: 0.10.0
libtpu: 0.0.40
codegen_flags: <defaults>
</compile_context>

<pallas_src>
import jax
import jax.numpy as jnp
from jax.experimental import pallas as pl
from jax.experimental.pallas import tpu as pltpu

INPUT_SIZE = 6
HIDDEN1 = 64
HIDDEN2 = 128
NUM_CLASSES = 5

IN_PAD = 8      # feature rows of xT (K of layer 1), padded 6 -> 8
OUT_PAD = 8     # logit rows, padded 5 -> 8 (one f32 sublane group)
LANE = 128      # batch is the lane axis -> tile quantum of 128
TB_MAX = 4096   # per-step batch tile cap; safe on v5e/v6e/v7x VMEM budgets


def _round_up(n, m):
    return ((n + m - 1) // m) * m


def _batch_tiling(B):
    """Pick (TB, Bp): TB a multiple of 128, >=2 grid steps when the batch is
    big enough to split (v7x megacore), padding bounded per tile."""
    Bp0 = _round_up(max(B, 1), LANE)
    if Bp0 <= LANE:
        return LANE, LANE
    n_tiles = max(2, pl.cdiv(Bp0, TB_MAX))
    TB = min(TB_MAX, _round_up(pl.cdiv(Bp0, n_tiles), LANE))
    Bp = _round_up(Bp0, TB)
    return TB, Bp


def mlp_kernel(x_ref, w1_ref, b1_ref, w2_ref, b2_ref, w3_ref, b3_ref, o_ref):
    # Feature-major: batch is the lane (last) axis of every tile.
    xt = x_ref[...].astype(jnp.bfloat16)                          # (IN_PAD, TB)
    # layer1 + ReLU  (bf16 MXU operands, f32 accumulate, f32 bias/ReLU on VPU)
    h1 = jnp.dot(w1_ref[...], xt, preferred_element_type=jnp.float32)
    h1 = jnp.maximum(h1 + b1_ref[...], 0.0)                       # (H1, TB)
    # layer2 + ReLU
    h2 = jnp.dot(w2_ref[...], h1.astype(jnp.bfloat16),
                 preferred_element_type=jnp.float32)
    h2 = jnp.maximum(h2 + b2_ref[...], 0.0)                       # (H2, TB)
    # layer3 (logits, no activation)
    out = jnp.dot(w3_ref[...], h2.astype(jnp.bfloat16),
                  preferred_element_type=jnp.float32) + b3_ref[...]
    o_ref[...] = out.astype(o_ref.dtype)                          # (OUT_PAD, TB)


def net_forward(x, params, out_dtype=jnp.float32):
    """Full MLP forward in a single batch-tiled, feature-major Pallas kernel."""
    w1, b1, w2, b2, w3, b3 = params   # PyTorch layout: W[out, in], b[out], f32
    B = x.shape[0]
    TB, Bp = _batch_tiling(B)

    # Single fused wrapper pass over x: transpose to feature-major and pad
    # (features 6->8, batch B->Bp).  Kept in f32; cast to bf16 inside kernel.
    xt = jnp.pad(x.T, ((0, IN_PAD - INPUT_SIZE), (0, Bp - B)))

    # Weights are already feature-major (out, in); pad ragged dims, cast bf16.
    w1p = jnp.pad(w1, ((0, 0), (0, IN_PAD - INPUT_SIZE))).astype(jnp.bfloat16)
    w2p = w2.astype(jnp.bfloat16)
    w3p = jnp.pad(w3, ((0, OUT_PAD - NUM_CLASSES), (0, 0))).astype(jnp.bfloat16)
    b1c = b1.reshape(HIDDEN1, 1)
    b2c = b2.reshape(HIDDEN2, 1)
    b3c = jnp.pad(b3, (0, OUT_PAD - NUM_CLASSES)).reshape(OUT_PAD, 1)

    grid = (Bp // TB,)
    flops = 2 * Bp * (IN_PAD * HIDDEN1 + HIDDEN1 * HIDDEN2 + HIDDEN2 * OUT_PAD)
    bytes_accessed = (
        xt.size * 4                                   # x (f32, feature-major)
        + (w1p.size + w2p.size + w3p.size) * 2        # weights (bf16)
        + (b1c.size + b2c.size + b3c.size) * 4        # biases (f32)
        + OUT_PAD * Bp * jnp.dtype(out_dtype).itemsize  # logits
    )

    out = pl.pallas_call(
        mlp_kernel,
        out_shape=jax.ShapeDtypeStruct((OUT_PAD, Bp), out_dtype),
        grid=grid,
        in_specs=[
            pl.BlockSpec((IN_PAD, TB), lambda i: (0, i)),        # xT tile
            pl.BlockSpec((HIDDEN1, IN_PAD), lambda i: (0, 0)),   # W1 (resident)
            pl.BlockSpec((HIDDEN1, 1), lambda i: (0, 0)),        # b1
            pl.BlockSpec((HIDDEN2, HIDDEN1), lambda i: (0, 0)),  # W2
            pl.BlockSpec((HIDDEN2, 1), lambda i: (0, 0)),        # b2
            pl.BlockSpec((OUT_PAD, HIDDEN2), lambda i: (0, 0)),  # W3
            pl.BlockSpec((OUT_PAD, 1), lambda i: (0, 0)),        # b3
        ],
        out_specs=pl.BlockSpec((OUT_PAD, TB), lambda i: (0, i)),
        compiler_params=pltpu.CompilerParams(
            dimension_semantics=("parallel",)),
        cost_estimate=pl.CostEstimate(
            flops=flops, transcendentals=0, bytes_accessed=bytes_accessed),
    )(xt, w1p, b1c, w2p, b2c, w3p, b3c)

    # Slice off padding and return batch-major logits (B, 5) like the module.
    return out[:NUM_CLASSES, :B].T


def init_params(key):
    """PyTorch nn.Linear-style init: W[out, in], b[out], U(-1/sqrt(fan_in), .)."""
    ks = jax.random.split(key, 6)

    def linear(kw, kb, fan_in, fan_out):
        bound = 1.0 / (fan_in ** 0.5)
        w = jax.random.uniform(kw, (fan_out, fan_in), jnp.float32, -bound, bound)
        b = jax.random.uniform(kb, (fan_out,), jnp.float32, -bound, bound)
        return w, b

    w1, b1 = linear(ks[0], ks[1], INPUT_SIZE, HIDDEN1)
    w2, b2 = linear(ks[2], ks[3], HIDDEN1, HIDDEN2)
    w3, b3 = linear(ks[4], ks[5], HIDDEN2, NUM_CLASSES)
    return (w1, b1, w2, b2, w3, b3)


def reference_forward(x, params):
    w1, b1, w2, b2, w3, b3 = params
    h1 = jnp.maximum(x @ w1.T + b1, 0.0)
    h2 = jnp.maximum(h1 @ w2.T + b2, 0.0)
    return h2 @ w3.T + b3


if __name__ == "__main__":
    key = jax.random.PRNGKey(0)
    kx, kp = jax.random.split(key)

    B = 8  # small batch; kernel also handles large / non-multiple-of-128 B
    x = jax.random.normal(kx, (B, INPUT_SIZE), jnp.float32)
    params = init_params(kp)

    out = jax.block_until_ready(net_forward(x, params))

    ref = reference_forward(x, params)
    assert out.shape == (B, NUM_CLASSES)
    # bf16 matmul operands with f32 accumulation -> loose tolerance vs f32 ref.
    assert jnp.allclose(out, ref, atol=5e-2, rtol=5e-2), "mismatch vs reference"

    print("KERNEL_OK")
</pallas_src>

<mosaic_0001>
module attributes {stable_mosaic.version = 11 : i64} {
  func.func @mlp_kernel(%arg0: i32, %arg1: memref<8x128xf32, #tpu.memory_space<vmem>>, %arg2: memref<64x8xbf16, #tpu.memory_space<vmem>>, %arg3: memref<64x1xf32, #tpu.memory_space<vmem>>, %arg4: memref<128x64xbf16, #tpu.memory_space<vmem>>, %arg5: memref<128x1xf32, #tpu.memory_space<vmem>>, %arg6: memref<8x128xbf16, #tpu.memory_space<vmem>>, %arg7: memref<8x1xf32, #tpu.memory_space<vmem>>, %arg8: memref<8x128xf32, #tpu.memory_space<vmem>>) attributes {dimension_semantics = [#tpu.dimension_semantics<parallel>], iteration_bounds = array<i64: 1>, scalar_prefetch = 0 : i64, scratch_operands = 0 : i64, tpu.core_type = #tpu.core_type<tc>, window_params = [{transform_indices = @transform_0, window_bounds = array<i64: 8, 128>}, {pipeline_mode = #tpu.pipeline_mode<synchronous>, transform_indices = @transform_1, window_bounds = array<i64: 64, 8>}, {pipeline_mode = #tpu.pipeline_mode<synchronous>, transform_indices = @transform_2, window_bounds = array<i64: 64, 1>}, {pipeline_mode = #tpu.pipeline_mode<synchronous>, transform_indices = @transform_3, window_bounds = array<i64: 128, 64>}, {pipeline_mode = #tpu.pipeline_mode<synchronous>, transform_indices = @transform_4, window_bounds = array<i64: 128, 1>}, {pipeline_mode = #tpu.pipeline_mode<synchronous>, transform_indices = @transform_5, window_bounds = array<i64: 8, 128>}, {pipeline_mode = #tpu.pipeline_mode<synchronous>, transform_indices = @transform_6, window_bounds = array<i64: 8, 1>}, {transform_indices = @transform_7, window_bounds = array<i64: 8, 128>}]} {
    %c0 = arith.constant 0 : index
    %c0_0 = arith.constant 0 : index
    %0 = vector.load %arg1[%c0, %c0_0] : memref<8x128xf32, #tpu.memory_space<vmem>>, vector<8x128xf32>
    %1 = arith.truncf %0 : vector<8x128xf32> to vector<8x128xbf16>
    %c0_1 = arith.constant 0 : index
    %c0_2 = arith.constant 0 : index
    %2 = vector.load %arg2[%c0_1, %c0_2] : memref<64x8xbf16, #tpu.memory_space<vmem>>, vector<64x8xbf16>
    %cst = arith.constant dense<0.000000e+00> : vector<64x128xf32>
    %3 = tpu.matmul %2, %1, %cst {dimension_numbers = #tpu.dot_dimension_numbers<[1], [0], [0], [1], [0, 0, 1, 1], [], []>} : vector<64x8xbf16>, vector<8x128xbf16>, vector<64x128xf32> -> vector<64x128xf32>
    %c0_3 = arith.constant 0 : index
    %c0_4 = arith.constant 0 : index
    %4 = vector.load %arg3[%c0_3, %c0_4] : memref<64x1xf32, #tpu.memory_space<vmem>>, vector<64x1xf32>
    %5 = vector.broadcast %4 : vector<64x1xf32> to vector<64x128xf32>
    %6 = arith.addf %3, %5 : vector<64x128xf32>
    %cst_5 = arith.constant 0.000000e+00 : f32
    %7 = vector.broadcast %cst_5 : f32 to vector<64x128xf32>
    %8 = arith.maximumf %6, %7 : vector<64x128xf32>
    %c0_6 = arith.constant 0 : index
    %c0_7 = arith.constant 0 : index
    %9 = vector.load %arg4[%c0_6, %c0_7] : memref<128x64xbf16, #tpu.memory_space<vmem>>, vector<128x64xbf16>
    %10 = arith.truncf %8 : vector<64x128xf32> to vector<64x128xbf16>
    %cst_8 = arith.constant dense<0.000000e+00> : vector<128x128xf32>
    %11 = tpu.matmul %9, %10, %cst_8 {dimension_numbers = #tpu.dot_dimension_numbers<[1], [0], [0], [1], [0, 0, 1, 1], [], []>} : vector<128x64xbf16>, vector<64x128xbf16>, vector<128x128xf32> -> vector<128x128xf32>
    %c0_9 = arith.constant 0 : index
    %c0_10 = arith.constant 0 : index
    %12 = vector.load %arg5[%c0_9, %c0_10] : memref<128x1xf32, #tpu.memory_space<vmem>>, vector<128x1xf32>
    %13 = vector.broadcast %12 : vector<128x1xf32> to vector<128x128xf32>
    %14 = arith.addf %11, %13 : vector<128x128xf32>
    %cst_11 = arith.constant 0.000000e+00 : f32
    %15 = vector.broadcast %cst_11 : f32 to vector<128x128xf32>
    %16 = arith.maximumf %14, %15 : vector<128x128xf32>
    %c0_12 = arith.constant 0 : index
    %c0_13 = arith.constant 0 : index
    %17 = vector.load %arg6[%c0_12, %c0_13] : memref<8x128xbf16, #tpu.memory_space<vmem>>, vector<8x128xbf16>
    %18 = arith.truncf %16 : vector<128x128xf32> to vector<128x128xbf16>
    %cst_14 = arith.constant dense<0.000000e+00> : vector<8x128xf32>
    %19 = tpu.matmul %17, %18, %cst_14 {dimension_numbers = #tpu.dot_dimension_numbers<[1], [0], [0], [1], [0, 0, 1, 1], [], []>} : vector<8x128xbf16>, vector<128x128xbf16>, vector<8x128xf32> -> vector<8x128xf32>
    %c0_15 = arith.constant 0 : index
    %c0_16 = arith.constant 0 : index
    %20 = vector.load %arg7[%c0_15, %c0_16] : memref<8x1xf32, #tpu.memory_space<vmem>>, vector<8x1xf32>
    %21 = vector.broadcast %20 : vector<8x1xf32> to vector<8x128xf32>
    %22 = arith.addf %19, %21 : vector<8x128xf32>
    %c0_17 = arith.constant 0 : index
    %c0_18 = arith.constant 0 : index
    %23 = vector.load %arg8[%c0_17, %c0_18] : memref<8x128xf32, #tpu.memory_space<vmem>>, vector<8x128xf32>
    tpu.vector_store %arg8[%c0_17, %c0_18], %22 {strides = array<i32>} : memref<8x128xf32, #tpu.memory_space<vmem>>, vector<8x128xf32>,
    return
  }
  func.func @transform_0(%arg0: i32) -> (i32, i32) {
    %c0_i32 = arith.constant 0 : i32
    %c0_i32_0 = arith.constant 0 : i32
    return %c0_i32, %arg0 : i32, i32
  }
  func.func @transform_1(%arg0: i32) -> (i32, i32) {
    %c0_i32 = arith.constant 0 : i32
    %c0_i32_0 = arith.constant 0 : i32
    %c0_i32_1 = arith.constant 0 : i32
    return %c0_i32, %c0_i32_0 : i32, i32
  }
  func.func @transform_2(%arg0: i32) -> (i32, i32) {
    %c0_i32 = arith.constant 0 : i32
    %c0_i32_0 = arith.constant 0 : i32
    %c0_i32_1 = arith.constant 0 : i32
    return %c0_i32, %c0_i32_0 : i32, i32
  }
  func.func @transform_3(%arg0: i32) -> (i32, i32) {
    %c0_i32 = arith.constant 0 : i32
    %c0_i32_0 = arith.constant 0 : i32
    %c0_i32_1 = arith.constant 0 : i32
    return %c0_i32, %c0_i32_0 : i32, i32
  }
  func.func @transform_4(%arg0: i32) -> (i32, i32) {
    %c0_i32 = arith.constant 0 : i32
    %c0_i32_0 = arith.constant 0 : i32
    %c0_i32_1 = arith.constant 0 : i32
    return %c0_i32, %c0_i32_0 : i32, i32
  }
  func.func @transform_5(%arg0: i32) -> (i32, i32) {
    %c0_i32 = arith.constant 0 : i32
    %c0_i32_0 = arith.constant 0 : i32
    %c0_i32_1 = arith.constant 0 : i32
    return %c0_i32, %c0_i32_0 : i32, i32
  }
  func.func @transform_6(%arg0: i32) -> (i32, i32) {
    %c0_i32 = arith.constant 0 : i32
    %c0_i32_0 = arith.constant 0 : i32
    %c0_i32_1 = arith.constant 0 : i32
    return %c0_i32, %c0_i32_0 : i32, i32
  }
  func.func @transform_7(%arg0: i32) -> (i32, i32) {
    %c0_i32 = arith.constant 0 : i32
    %c0_i32_0 = arith.constant 0 : i32
    return %c0_i32, %arg0 : i32, i32
  }
}

</mosaic_0001>

<bundles_post_ra>
// kernel: tpu_custom_call.1
= control target key start
LH: loop header
LB: loop body
LE: loop exit
PB: predicated region body
PF: predicated region fallthrough
CT: control target
= control target key end

     0   :  { %vm119_vm0 = vcmask 1043456   ;;  %vm106_vm1 = vcmask 64512   ;;  %v705_v6 = vmov 0   ;;  %s899_s0 = inlined_call_operand.vmem [shape: f32[8,128], index: 0, kind: input, shape index: {}]   ;;  %s900_s1 = inlined_call_operand.vmem [shape: bf16[64,8], index: 1, kind: input, shape index: {}]   ;;  %s901_s2 = inlined_call_operand.vmem [shape: f32[64,1], index: 2, kind: input, shape index: {}]   ;;  %s902_s3 = inlined_call_operand.vmem [shape: bf16[128,64], index: 3, kind: input, shape index: {}]   ;;  %s903_s4 = inlined_call_operand.vmem [shape: f32[128,1], index: 4, kind: input, shape index: {}]   ;;  %s904_s5 = inlined_call_operand.vmem [shape: bf16[8,128], index: 5, kind: input, shape index: {}]   ;;  %s905_s6 = inlined_call_operand.vmem [shape: f32[8,1], index: 6, kind: input, shape index: {}]   ;;  %s906_s7 = inlined_call_operand.hbm [shape: f32[8,128], index: 7, kind: output, shape index: {}]  }
   0x1   :  { %v28_v0 = vld [vmem:[%s899_s0] sm:$0xff]  ;;  %v672_v4 = vld [vmem:[%s900_s1 + $0x8] sm:$0xff]   ;;  %v673_v5 = vld [vmem:[%s900_s1 + $0x10] sm:$0xff]   ;;  %669 = vset.pattern.permute.xlu0 %v705_v6  ;;  %670 = vset.pattern.permute.xlu1 %v705_v6 }
   0x2   :  { %v29_v1 = vpack.c.bf16 %v28_v0, %v28_v0  ;;  %v671_v2 = vld [vmem:[%s900_s1] sm:$0xff]   ;;  %v44_v7 = vld [vmem:[%s901_s2 + $0x30] sm:$0xff]  ;;  %v45_v9 = vld [vmem:[%s901_s2 + $0x38] sm:$0xff] }
   0x3   :  { %612 = vmatprep.mubr.msk.bf16.mxu0 %vm106_vm1, %v671_v2  ;;  %78 = vperm.xlu0 %669, %v44_v7   ;;  %v42_v8 = vld [vmem:[%s901_s2 + $0x20] sm:$0xff]  ;;  %v43_v10 = vld [vmem:[%s901_s2 + $0x28] sm:$0xff]  ;;  %v40_v11 = vld [vmem:[%s901_s2 + $0x10] sm:$0xff] }
   0x4   :  { %664 = vmatprep.subr.msk.bf16.mxu0 %vm119_vm0, %v29_v1  ;;  %v121_v3 = vsel %vm119_vm0, %v29_v1, 0  ;;  %68 = vperm.xlu1 %670, %v42_v8   ;;  %v674_v12 = vld [vmem:[%s900_s1 + $0x18] sm:$0xff]   ;;  %v38_v14 = vld [vmem:[%s901_s2] sm:$0xff]  ;;  %v39_v15 = vld [vmem:[%s901_s2 + $0x8] sm:$0xff] }
   0x5   :  { %611 = vmatpush3.bf16.msra.mxu0 %v121_v3  ;;  %v41_v13 = vld [vmem:[%s901_s2 + $0x18] sm:$0xff]  ;;  %v230_v16 = vld [vmem:[%s903_s4 + $0x70] sm:$0xff] }
   0x7   :  { %83 = vperm.xlu0 %669, %v45_v9  }
   0x8   :  { %613 = vmatmul.mubr.msk.bf16.vlgmr.msra.gmra.mxu0 %vm106_vm1, %v672_v4  ;;  %73 = vperm.xlu1 %670, %v43_v10  }
   0x9   :  { %616 = vmatprep.mubr.msk.bf16.mxu0 %vm106_vm1, %v673_v5 }
   0xb   :  { %58 = vperm.xlu0 %669, %v40_v11  }
   0xc   :  { %63 = vperm.xlu1 %670, %v41_v13  }
   0xf   :  { %48 = vperm.xlu0 %669, %v38_v14  }
  0x10   :  { %617 = vmatmul.mubr.msk.bf16.gmra.mxu0 %vm106_vm1, %v674_v12  ;;  %53 = vperm.xlu1 %670, %v39_v15  }
  0x11   :  { %12 = vsyncpa [#allocation3], 0  ;;  %v231_v17 = vld [vmem:[%s903_s4 + $0x78] sm:$0xff]  ;;  %v228_v18 = vld [vmem:[%s903_s4 + $0x60] sm:$0xff]  ;;  %vm352_vm2 = vcmask 523264   ;;  %v706_v13 = vmov 0.0  }
  0x12   :  { %v229_v19 = vld [vmem:[%s903_s4 + $0x68] sm:$0xff]  ;;  %v226_v20 = vld [vmem:[%s903_s4 + $0x50] sm:$0xff]  ;;  %v227_v21 = vld [vmem:[%s903_s4 + $0x58] sm:$0xff]  ;;  %644 = vmatprep.subr.bf16.mxu0 %v706_v13  ;;  %vm707_vm3 = vmmov 0   ;;  %s708_s23 = smov [#allocation2]  }
  0x13   :  { %304 = vperm.xlu0 %669, %v230_v16   ;;  %v224_v22 = vld [vmem:[%s903_s4 + $0x40] sm:$0xff]  ;;  %v225_v23 = vld [vmem:[%s903_s4 + $0x48] sm:$0xff]  ;;  %v222_v24 = vld [vmem:[%s903_s4 + $0x30] sm:$0xff]  ;;  %660 = vmatprep.mubr.msk.bf16.mxu0 %vm707_vm3, %v706_v13  ;;  %s552_s24 = sshll.u32 %s708_s23, 4  ;;  %s553_s24 = int_to_ptr.vmem [resolvable:$true] %s552_s24 }
  0x14   :  { %309 = vperm.xlu1 %670, %v231_v17   ;;  %v223_v25 = vld [vmem:[%s903_s4 + $0x38] sm:$0xff]  ;;  %v220_v26 = vld [vmem:[%s903_s4 + $0x20] sm:$0xff]  ;;  %v221_v27 = vld [vmem:[%s903_s4 + $0x28] sm:$0xff]  ;;  %s683_s25 = scalar_lea.vmem %s553_s24, 128  ;;  %p688_p1 = scmp.lt.s32.totalorder %s553_s24, %s553_s24 }
  0x15   :  { %v218_v28 = vld [vmem:[%s903_s4 + $0x10] sm:$0xff]  ;;  %v219_v29 = vld [vmem:[%s903_s4 + $0x18] sm:$0xff]  ;;  %v216_v30 = vld [vmem:[%s903_s4] sm:$0xff]  ;;  %p684_p0 = scmp.ne.s32.totalorder %s553_s24, %s683_s25  ;;  %p689_p2 = scmp.lt.s32.totalorder %s683_s25, %s683_s25 }
  0x16   :  { %v217_v31 = vld [vmem:[%s903_s4 + $0x8] sm:$0xff]  ;;  %v499_v32 = vld [vmem:[%s905_s6] sm:$0xff]  ;;  %v677_v7 = vld [vmem:[%s902_s3 + $0x10] sm:$0xff]  }
  0x17   :  { %294 = vperm.xlu0 %669, %v228_v18   ;;  %v675_v33 = vld [vmem:[%s902_s3] sm:$0xff]   ;;  %v676_v6 = vld [vmem:[%s902_s3 + $0x8] sm:$0xff]   ;;  %v678_v8 = vld [vmem:[%s902_s3 + $0x18] sm:$0xff]   ;;  %p690_p3 = por %p689_p2, %p688_p1 }
  0x18   :  { %299 = vperm.xlu1 %670, %v229_v19   ;;  %628 = vmatprep.mubr.msk.bf16.mxu1 %vm352_vm2, %v675_v33  ;;  %v679_v9 = vld [vmem:[%s902_s3 + $0x20] sm:$0xff]   ;;  %v680_v10 = vld [vmem:[%s902_s3 + $0x28] sm:$0xff]   ;;  %v681_v11 = vld [vmem:[%s902_s3 + $0x30] sm:$0xff]  }
  0x19   :  { %v682_v12 = vld [vmem:[%s902_s3 + $0x38] sm:$0xff]   ;;  %p691_p4 = pnand %p690_p3, %p684_p0 }
  0x1b   :  { %284 = vperm.xlu0 %669, %v226_v20  }
  0x1c   :  { %289 = vperm.xlu1 %670, %v227_v21  }
  0x1f   :  { %274 = vperm.xlu0 %669, %v224_v22  }
  0x20   :  { %279 = vperm.xlu1 %670, %v225_v23  }
  0x23   :  { %264 = vperm.xlu0 %669, %v222_v24  }
  0x24   :  { %269 = vperm.xlu1 %670, %v223_v25  }
  0x27   :  { %254 = vperm.xlu0 %669, %v220_v26  }
  0x28   :  { %259 = vperm.xlu1 %670, %v221_v27  }
  0x2b   :  { %244 = vperm.xlu0 %669, %v218_v28  }
  0x2c   :  { %249 = vperm.xlu1 %670, %v219_v29  }
  0x2f   :  { %234 = vperm.xlu0 %669, %v216_v30  }
  0x30   :  { %239 = vperm.xlu1 %670, %v217_v31  }
  0x33   :  { %502 = vperm.xlu0 %669, %v499_v32  }
  0x7e   :  { %v79_v36 = vpop.permute.xlu0 %78 }
  0x7f   :  { %v69_v34 = vpop.permute.xlu1 %68 }
  0x82   :  { %v84_v41 = vpop.permute.xlu0 %83 }
  0x83   :  { %v74_v39 = vpop.permute.xlu1 %73 }
  0x86   :  { %v59_v49 = vpop.permute.xlu0 %58 }
  0x87   :  { %v64_v45 = vpop.permute.xlu1 %63 }
  0x8a   :  { %v49_v63 = vpop.permute.xlu0 %48 }
  0x8b   :  { %v54_v59 = vpop.permute.xlu1 %53 }
  0x8e   :  { %v305_v21 = vpop.permute.xlu0 %304 }
  0x8f   :  { %v310_v19 = vpop.permute.xlu1 %309 }
  0x92   :  { %v295_v26 = vpop.permute.xlu0 %294 }
  0x93   :  { %v300_v24 = vpop.permute.xlu1 %299 }
  0x96   :  { %v285_v31 = vpop.permute.xlu0 %284 }
  0x97   :  { %v290_v29 = vpop.permute.xlu1 %289 }
  0xc8   :  { %v614_v35 = vpop.f32.mrf.mxu0 }
  0xc9   :  { %v166_v55 = vadd.f32 %v614_v35, %v59_v49  ;;  %v280_v35 = vpop.permute.xlu1 %279 }
  0xca   :  { %v157_v37 = vpop.f32.mrf.mxu0 }
  0xcb   :  { %v190_v0 = vmax.f32 %v166_v55, 0.0  ;;  %v158_v1 = vadd.f32 %v157_v37, %v49_v63 }
  0xcc   :  { %v615_v38 = vpop.f32.mrf.mxu0 }
  0xcd   :  { %v169_v51 = vadd.f32 %v615_v38, %v64_v45  ;;  %v188_v4 = vmax.f32 %v158_v1, 0.0  ;;  %v275_v38 = vpop.permute.xlu0 %274 }
  0xce   :  { %v160_v40 = vpop.f32.mrf.mxu0 }
  0xcf   :  { %v191_v60 = vmax.f32 %v169_v51, 0.0  ;;  %v161_v61 = vadd.f32 %v160_v40, %v54_v59 }
  0xd0   :  { %v618_v42 = vpop.f32.mrf.mxu0 }
  0xd1   :  { %v182_v44 = vadd.f32 %v618_v42, %v79_v36  ;;  %v213_v2 = vpack.c.bf16 %v191_v60, %v190_v0  ;;  %v189_v3 = vmax.f32 %v161_v61, 0.0 }
  0xd2   :  { %v173_v43 = vpop.f32.mrf.mxu0 }
  0xd3   :  { %v174_v47 = vadd.f32 %v173_v43, %v69_v34  ;;  %v194_v52 = vmax.f32 %v182_v44, 0.0  ;;  %v212_v5 = vpack.c.bf16 %v189_v3, %v188_v4 }
  0xd4   :  { %v619_v46 = vpop.f32.mrf.mxu0 }
  0xd5   :  { %v185_v48 = vadd.f32 %v619_v46, %v84_v41  ;;  %v192_v56 = vmax.f32 %v174_v47, 0.0  ;;  %v270_v47 = vpop.permute.xlu1 %269 }
  0xd6   :  { %v176_v50 = vpop.f32.mrf.mxu0 }
  0xd7   :  { %v195_v53 = vmax.f32 %v185_v48, 0.0  ;;  %v177_v54 = vadd.f32 %v176_v50, %v74_v39  ;;  %v265_v50 = vpop.permute.xlu0 %264 }
  0xd9   :  { %v193_v57 = vmax.f32 %v177_v54, 0.0  ;;  %v215_v58 = vpack.c.bf16 %v195_v53, %v194_v52 }
  0xdb   :  { %v214_v62 = vpack.c.bf16 %v193_v57, %v192_v56  ;;  %620 = vmatprep.subr.bf16.mxu1 %v215_v58  ;;  %v260_v56 = vpop.permute.xlu1 %259  ;;  %v255_v60 = vpop.permute.xlu0 %254 }
  0xdc   :  { %621 = vmatpush3.bf16.msra.mxu1 %v215_v58 }
  0xdd   :  { %622 = vmatprep.subr.bf16.mxu1 %v214_v62 }
  0xe0   :  { %623 = vmatpush3.bf16.msra.mxu1 %v214_v62 }
  0xe1   :  { %624 = vmatprep.subr.bf16.mxu1 %v213_v2 }
  0xe4   :  { %625 = vmatpush3.bf16.msra.mxu1 %v213_v2  ;;  %v250_v2 = vpop.permute.xlu1 %249 }
  0xe5   :  { %626 = vmatprep.subr.bf16.mxu1 %v212_v5 }
  0xe8   :  { %627 = vmatpush3.bf16.msra.mxu1 %v212_v5  ;;  %v245_v5 = vpop.permute.xlu0 %244 }
  0xeb   :  { %629 = vmatmul.mubr.msk.bf16.vlgmr.msra.gmra.mxu1 %vm352_vm2, %v676_v6 }
  0xec   :  { %632 = vmatprep.mubr.msk.bf16.mxu1 %vm352_vm2, %v677_v7 }
  0xf3   :  { %633 = vmatmul.mubr.msk.bf16.gmra.mxu1 %vm352_vm2, %v678_v8 }
  0xf4   :  { %636 = vmatprep.mubr.msk.bf16.mxu1 %vm352_vm2, %v679_v9 }
  0xfb   :  { %637 = vmatmul.mubr.msk.bf16.gmra.mxu1 %vm352_vm2, %v680_v10 }
  0xfc   :  { %640 = vmatprep.mubr.msk.bf16.mxu1 %vm352_vm2, %v681_v11  ;;  %v240_v11 = vpop.permute.xlu1 %239 }
 0x103   :  { %641 = vmatmul.mubr.msk.bf16.gmra.mxu1 %vm352_vm2, %v682_v12 }
 0x1ab   :  { %v877_v14 = vpop.f32.mrf.mxu1 }
 0x1ac   :  { %v420_v9 = vadd.f32 %v877_v14, %v245_v5 }
 0x1ad   :  { %v879_v15 = vpop.f32.mrf.mxu1 }
 0x1af   :  { %v631_v16 = vpop.f32.mrf.mxu1 }
 0x1b0   :  { %v423_v6 = vadd.f32 %v631_v16, %v250_v2 }
 0x1b1   :  { %v881_v17 = vpop.f32.mrf.mxu1 }
 0x1b2   :  { %v477_v12 = vmax.f32 %v423_v6, 0.0 }
 0x1b3   :  { %v634_v18 = vpop.f32.mrf.mxu1 }
 0x1b4   :  { %v436_v61 = vadd.f32 %v634_v18, %v265_v50  ;;  %v415_v18 = vadd.f32 %v881_v17, %v240_v11  ;;  %v490_v17 = vld [vmem:[%s904_s5] sm:$0xf] }
 0x1b5   :  { %v427_v20 = vpop.f32.mrf.mxu1 }
 0x1b6   :  { %v480_v3 = vmax.f32 %v436_v61, 0.0  ;;  %v428_v4 = vadd.f32 %v427_v20, %v255_v60  ;;  %v476_v20 = vmax.f32 %v420_v9, 0.0 }
 0x1b7   :  { %v635_v22 = vpop.f32.mrf.mxu1 }
 0x1b8   :  { %v439_v57 = vadd.f32 %v635_v22, %v270_v47  ;;  %v478_v10 = vmax.f32 %v428_v4, 0.0  ;;  %v492_v16 = vpack.c.bf16 %v477_v12, %v476_v20 }
 0x1b9   :  { %v430_v23 = vpop.f32.mrf.mxu1 }
 0x1ba   :  { %v481_v63 = vmax.f32 %v439_v57, 0.0  ;;  %v431_v0 = vadd.f32 %v430_v23, %v260_v56  ;;  %v475_v23 = vmax.f32 %v415_v18, 0.0 }
 0x1bb   :  { %v638_v25 = vpop.f32.mrf.mxu1 }
 0x1bc   :  { %v452_v48 = vadd.f32 %v638_v25, %v285_v31  ;;  %v494_v7 = vpack.c.bf16 %v481_v63, %v480_v3  ;;  %v479_v8 = vmax.f32 %v431_v0, 0.0 }
 0x1bd   :  { %v443_v27 = vpop.f32.mrf.mxu1 }
 0x1be   :  { %v484_v54 = vmax.f32 %v452_v48, 0.0  ;;  %v444_v55 = vadd.f32 %v443_v27, %v275_v38 }
 0x1bf   :  { %v639_v28 = vpop.f32.mrf.mxu1 }
 0x1c0   :  { %v455_v44 = vadd.f32 %v639_v28, %v290_v29  ;;  %v482_v62 = vmax.f32 %v444_v55, 0.0 }
 0x1c1   :  { %v446_v30 = vpop.f32.mrf.mxu1 }
 0x1c2   :  { %v485_v51 = vmax.f32 %v455_v44, 0.0  ;;  %v447_v52 = vadd.f32 %v446_v30, %v280_v35 }
 0x1c3   :  { %v642_v32 = vpop.f32.mrf.mxu1 }
 0x1c4   :  { %v468_v34 = vadd.f32 %v642_v32, %v305_v21  ;;  %v496_v58 = vpack.c.bf16 %v485_v51, %v484_v54  ;;  %v483_v59 = vmax.f32 %v447_v52, 0.0  ;;  %v235_v21 = vpop.permute.xlu0 %234 }
 0x1c5   :  { %v459_v33 = vpop.f32.mrf.mxu1  ;;  %v412_v22 = vadd.f32 %v879_v15, %v235_v21 }
 0x1c6   :  { %v488_v40 = vmax.f32 %v468_v34, 0.0  ;;  %v460_v41 = vadd.f32 %v459_v33, %v295_v26  ;;  %v495_v1 = vpack.c.bf16 %v483_v59, %v482_v62 }
 0x1c7   :  { %v643_v36 = vpop.f32.mrf.mxu1 }
 0x1c8   :  { %v471_v37 = vadd.f32 %v643_v36, %v310_v19  ;;  %v486_v49 = vmax.f32 %v460_v41, 0.0  ;;  %v493_v19 = vpack.c.bf16 %v479_v8, %v478_v10  ;;  %v503_v25 = vpop.permute.xlu0 %502 }
 0x1c9   :  { %v462_v39 = vpop.f32.mrf.mxu1 }
 0x1ca   :  { %v489_v42 = vmax.f32 %v471_v37, 0.0  ;;  %v463_v43 = vadd.f32 %v462_v39, %v300_v24  ;;  %v474_v24 = vmax.f32 %v412_v22, 0.0 }
 0x1cc   :  { %v498_v45 = vpack.c.bf16 %v489_v42, %v488_v40  ;;  %v487_v46 = vmax.f32 %v463_v43, 0.0  ;;  %v491_v14 = vpack.c.bf16 %v475_v23, %v474_v24 }
 0x1ce   :  { %645 = vmatpush3.bf16.msra.mxu0 %v498_v45  ;;  %v497_v53 = vpack.c.bf16 %v487_v46, %v486_v49 }
 0x1cf   :  { %646 = vmatprep.subr.bf16.mxu0 %v706_v13 }
 0x1d2   :  { %647 = vmatpush3.bf16.msra.mxu0 %v497_v53 }
 0x1d3   :  { %648 = vmatprep.subr.bf16.mxu0 %v706_v13 }
 0x1d6   :  { %649 = vmatpush3.bf16.msra.mxu0 %v496_v58 }
 0x1d7   :  { %650 = vmatprep.subr.bf16.mxu0 %v706_v13 }
 0x1da   :  { %651 = vmatpush3.bf16.msra.mxu0 %v495_v1 }
 0x1db   :  { %652 = vmatprep.subr.bf16.mxu0 %v706_v13 }
 0x1de   :  { %653 = vmatpush3.bf16.msra.mxu0 %v494_v7 }
 0x1df   :  { %654 = vmatprep.subr.bf16.mxu0 %v706_v13 }
 0x1e2   :  { %655 = vmatpush3.bf16.msra.mxu0 %v493_v19 }
 0x1e3   :  { %656 = vmatprep.subr.bf16.mxu0 %v706_v13 }
 0x1e6   :  { %657 = vmatpush3.bf16.msra.mxu0 %v492_v16 }
 0x1e7   :  { %658 = vmatprep.subr.bf16.mxu0 %v706_v13 }
 0x1ea   :  { %659 = vmatpush3.bf16.msra.mxu0 %v491_v14 }
 0x1ed   :  { %661 = vmatmul.mubr.bf16.vlgmr.msra.gmra.mxu0 %v490_v17 }
 0x2ad   :  { %v539_v15 = vpop.f32.mrf.mxu0 }
 0x2ae   :  { %v540_v26 = vadd.f32 %v539_v15, %v503_v25 }
 0x2af   :  { %v662_v27 = vpop.f32.mrf.mxu0 }
 0x2b0   :  { %545 = vst [vmem:[#allocation2] sm:$0xff] %v540_v26 }
 0x2b1   :  { %v542_v28 = vpop.f32.mrf.mxu0 }
 0x2b2   :  { %694 = shalt.err (!%p691_p4)
}
 0x2b3   :  { %555 = dma.vmem_to_hbm [thread:$0]  %s553_s24, 128, %s906_s7, [#allocation3]   ;;  %v663_v13 = vpop.f32.mrf.mxu0 }
 0x2b4   :  { %703 = dma.done.wait [#allocation3], 128  }
 0x2b5   :  { %704 = vsyncadd [#allocation3], 4294967168 }
 0x2b6   :  { %559 = vsyncpa [#allocation3], 1 }

</bundles_post_ra>
